<compile_context>
chip_gen: v7x
topology: tpu7x:2x2x1
jax: 0.10.0
libtpu: 0.0.40
codegen_flags: <defaults>
</compile_context>

<pallas_src>
import functools

import jax
import jax.numpy as jnp
from jax.experimental import pallas as pl
from jax.experimental.pallas import tpu as pltpu

# ---------------- model dimensions (from DCNModel.__init__) ----------------
NUM_DENSE = 16
EMB_DIMS = {
    "userid": 16,
    "device": 2,
    "authorid": 4,
    "bgm_song_id": 4,
    "bgm_singer_id": 4,
    "manual_tag_list": 4,
}
CATEGORY_EMB_DIM = sum(EMB_DIMS.values())          # 34
INPUT_DIM = NUM_DENSE + CATEGORY_EMB_DIM           # 50
PAD_DIM = 64                                       # lane-friendly padded input dim
HIDDEN_UNITS = [512, 256, 128]
NUM_CROSS_LAYER = 1

# small synthetic vocab sizes (module would read vocab files; synthetic here)
VOCAB_SIZES = {
    "userid": 21,
    "device": 4,
    "authorid": 11,
    "bgm_song_id": 11,
    "bgm_singer_id": 11,
    "manual_tag_list": 13,
}


def _round_up(x, m):
    return ((x + m - 1) // m) * m


# ------------------------------- Pallas kernel ------------------------------
def dcn_kernel(
    x_ref,          # (TB, 64)  padded concat_all tile, f32
    wl_ref,         # (1, 64)   cross weight (transposed, zero-padded), f32
    w1_ref, b1_ref, # (64, 512) bf16, (1, 512) f32
    w2_ref, b2_ref, # (512, 256) bf16, (1, 256) f32
    w3_ref, b3_ref, # (256, 128) bf16, (1, 128) f32
    woc_ref,        # (1, 64)   output-weight slice for cross path (row, padded), f32
    wod_ref,        # (1, 128)  output-weight slice for dnn path (row), f32
    bo_ref,         # (1, 1)    effective output bias (bo + bl.T @ wo_cross), f32
    out_ref,        # out: (TB, 2)  [:,0]=prob, [:,1]=logit
):
    x0 = x_ref[...]                                                    # (TB, 64) f32

    # ---- cross path: rank-1 dots on the VPU/XLU (no MXU), algebraically folded.
    #   s = x0 @ wl ; cross = x0*(s+1) + bl.T
    #   cross @ wo_cross = (s+1) * (x0 @ wo_cross) + (bl.T @ wo_cross)   [in bo_eff]
    s = jnp.sum(x0 * wl_ref[...], axis=-1, keepdims=True)              # (TB, 1)
    t = jnp.sum(x0 * woc_ref[...], axis=-1, keepdims=True)             # (TB, 1)
    logit_cross = (s + 1.0) * t                                        # (TB, 1)

    # ---- DNN tower on the MXU (bf16 inputs, f32 accumulation, f32 bias/ReLU).
    h = jnp.dot(x0.astype(jnp.bfloat16), w1_ref[...],
                preferred_element_type=jnp.float32) + b1_ref[...]
    h = jnp.maximum(h, 0.0)
    h = jnp.dot(h.astype(jnp.bfloat16), w2_ref[...],
                preferred_element_type=jnp.float32) + b2_ref[...]
    h = jnp.maximum(h, 0.0)
    h = jnp.dot(h.astype(jnp.bfloat16), w3_ref[...],
                preferred_element_type=jnp.float32) + b3_ref[...]
    h = jnp.maximum(h, 0.0)                                            # (TB, 128) f32

    # ---- output layer: dnn part is also a rank-1 dot -> VPU + lane reduce.
    logit_dnn = jnp.sum(h * wod_ref[...], axis=-1, keepdims=True)      # (TB, 1)
    logit = logit_cross + logit_dnn + bo_ref[...]                      # (TB, 1)

    out_ref[...] = jnp.concatenate([jax.nn.sigmoid(logit), logit], axis=-1)


# ------------------------------- host wrapper --------------------------------
def dcn_forward(concat_all, kparams, tb=256):
    """concat_all: (B, 50) f32.  Returns (prob (B,1), logit (B,1))."""
    B = concat_all.shape[0]
    TB = min(tb, _round_up(max(B, 1), 16))   # multiple of 16 (bf16 sublane packing)
    B_pad = _round_up(B, TB)

    # pad batch to a tile multiple and features 50 -> 64 (zeros; math-identical)
    x = jnp.pad(concat_all.astype(jnp.float32),
                ((0, B_pad - B), (0, PAD_DIM - INPUT_DIM)))

    grid = (pl.cdiv(B_pad, TB),)

    def x_map(i):
        return (i, 0)

    def w_map(i):            # weights: same block every grid step -> DMA'd once
        return (0, 0)

    def wspec(shape):
        return pl.BlockSpec(shape, w_map)

    in_specs = [
        pl.BlockSpec((TB, PAD_DIM), x_map),     # x tile
        wspec((1, PAD_DIM)),                    # wl row
        wspec((PAD_DIM, HIDDEN_UNITS[0])), wspec((1, HIDDEN_UNITS[0])),
        wspec((HIDDEN_UNITS[0], HIDDEN_UNITS[1])), wspec((1, HIDDEN_UNITS[1])),
        wspec((HIDDEN_UNITS[1], HIDDEN_UNITS[2])), wspec((1, HIDDEN_UNITS[2])),
        wspec((1, PAD_DIM)),                    # wo_cross row
        wspec((1, HIDDEN_UNITS[2])),            # wo_dnn row
        wspec((1, 1)),                          # bo_eff
    ]
    out_spec = pl.BlockSpec((TB, 2), x_map)

    # advisory cost estimate for the XLA scheduler
    mm_flops = 2 * B_pad * (PAD_DIM * HIDDEN_UNITS[0]
                            + HIDDEN_UNITS[0] * HIDDEN_UNITS[1]
                            + HIDDEN_UNITS[1] * HIDDEN_UNITS[2])
    vec_flops = 2 * B_pad * (2 * PAD_DIM + HIDDEN_UNITS[2])
    weight_bytes = 2 * (PAD_DIM * HIDDEN_UNITS[0]
                        + HIDDEN_UNITS[0] * HIDDEN_UNITS[1]
                        + HIDDEN_UNITS[1] * HIDDEN_UNITS[2]) \
        + 4 * (sum(HIDDEN_UNITS) + 2 * PAD_DIM + HIDDEN_UNITS[2] + 1)
    cost = pl.CostEstimate(
        flops=int(mm_flops + vec_flops),
        transcendentals=int(B_pad),
        bytes_accessed=int(B_pad * PAD_DIM * 4 + weight_bytes + B_pad * 2 * 4),
    )

    out = pl.pallas_call(
        dcn_kernel,
        out_shape=jax.ShapeDtypeStruct((B_pad, 2), jnp.float32),
        grid=grid,
        in_specs=in_specs,
        out_specs=out_spec,
        compiler_params=pltpu.CompilerParams(
            dimension_semantics=("parallel",),
        ),
        cost_estimate=cost,
    )(
        x,
        kparams["wl_row"],
        kparams["w1"], kparams["b1"],
        kparams["w2"], kparams["b2"],
        kparams["w3"], kparams["b3"],
        kparams["wo_cross_row"], kparams["wo_dnn_row"],
        kparams["bo_eff"],
    )

    prob = out[:B, 0:1]
    logit = out[:B, 1:2]
    return prob, logit


# ---------------------------- parameter construction ------------------------
def init_params(key):
    """Raw f32 params in PyTorch layout (for the reference) + embedding tables."""
    ks = jax.random.split(key, 16)
    p = {}

    # embedding tables (nn.Embedding default ~ N(0,1); scaled small here)
    p["emb"] = {}
    for i, (name, dim) in enumerate(EMB_DIMS.items()):
        p["emb"][name] = (
            jax.random.normal(ks[i], (VOCAB_SIZES[name], dim), jnp.float32) * 0.05
        )

    # cross layer: wl ~ xavier_normal((50,1)), bl = 0  (per cross_layer())
    std = (2.0 / (INPUT_DIM + 1)) ** 0.5
    p["wl"] = jax.random.normal(ks[6], (INPUT_DIM, 1), jnp.float32) * std
    p["bl"] = jnp.zeros((INPUT_DIM, 1), jnp.float32)

    # DNN linears, stored (in, out) so forward is x @ W + b (same math as PyTorch)
    dims = [INPUT_DIM] + HIDDEN_UNITS
    for li in range(3):
        din, dout = dims[li], dims[li + 1]
        bound = 1.0 / (din ** 0.5)
        p[f"w{li + 1}"] = jax.random.uniform(
            ks[7 + 2 * li], (din, dout), jnp.float32, -bound, bound)
        p[f"b{li + 1}"] = jax.random.uniform(
            ks[8 + 2 * li], (1, dout), jnp.float32, -bound, bound)

    # output layer: Linear(50 + 128, 1)
    dout_in = INPUT_DIM + HIDDEN_UNITS[-1]
    bound = 1.0 / (dout_in ** 0.5)
    p["wo"] = jax.random.uniform(ks[13], (dout_in, 1), jnp.float32, -bound, bound)
    p["bo"] = jax.random.uniform(ks[14], (1, 1), jnp.float32, -bound, bound)
    return p


def prepare_kernel_params(p):
    """Pad/pack/cast raw params into the kernel-ready layout."""
    kp = {}
    pad_rows = PAD_DIM - INPUT_DIM

    # cross weight as a (1, 64) row (zero-padded)
    kp["wl_row"] = jnp.pad(p["wl"].T, ((0, 0), (0, pad_rows)))

    # DNN tower: pad K of the first layer to 64, cast weights to bf16
    kp["w1"] = jnp.pad(p["w1"], ((0, pad_rows), (0, 0))).astype(jnp.bfloat16)
    kp["w2"] = p["w2"].astype(jnp.bfloat16)
    kp["w3"] = p["w3"].astype(jnp.bfloat16)
    kp["b1"], kp["b2"], kp["b3"] = p["b1"], p["b2"], p["b3"]

    # output layer split across the concat boundary, stored as rows
    wo_cross = p["wo"][:INPUT_DIM]                       # (50, 1)
    wo_dnn = p["wo"][INPUT_DIM:]                         # (128, 1)
    kp["wo_cross_row"] = jnp.pad(wo_cross.T, ((0, 0), (0, pad_rows)))   # (1, 64)
    kp["wo_dnn_row"] = wo_dnn.T                                          # (1, 128)

    # fold the (zero) cross-layer bias contribution into the output bias:
    #   cross @ wo_cross = (s+1)*(x0 @ wo_cross) + bl.T @ wo_cross
    kp["bo_eff"] = p["bo"] + p["bl"].T @ wo_cross        # (1, 1)
    return kp


def embed_and_concat(dense, category, params):
    # glue (gather + concat) in plain JAX; hot path runs in the Pallas kernel
    embs = [jnp.take(params["emb"][name], category[name], axis=0) for name in EMB_DIMS]
    category_emb = jnp.concatenate(embs, axis=1)            # (B, 34)
    return jnp.concatenate([dense, category_emb], axis=1)   # (B, 50)


# ------------------------------ pure-JAX reference ---------------------------
def dcn_reference(concat_all, p):
    x0 = concat_all
    xl_wl = x0 @ p["wl"]                                     # (B, 1)
    cross = x0 * xl_wl + p["bl"].T + x0                      # (B, 50)
    h = jnp.maximum(x0 @ p["w1"] + p["b1"], 0.0)
    h = jnp.maximum(h @ p["w2"] + p["b2"], 0.0)
    h = jnp.maximum(h @ p["w3"] + p["b3"], 0.0)
    out = jnp.concatenate([cross, h], axis=1)
    logit = out @ p["wo"] + p["bo"]
    return jax.nn.sigmoid(logit), logit


# ----------------------------------- main ------------------------------------
if __name__ == "__main__":
    key = jax.random.PRNGKey(0)
    kp_, kd, *kc = jax.random.split(key, 2 + len(EMB_DIMS))

    B = 8
    params = init_params(kp_)
    kparams = prepare_kernel_params(params)

    dense = jax.random.normal(kd, (B, NUM_DENSE), jnp.float32)
    category = {
        name: jax.random.randint(kc[i], (B,), 0, VOCAB_SIZES[name])
        for i, name in enumerate(EMB_DIMS)
    }

    concat_all = embed_and_concat(dense, category, params)

    fwd = jax.jit(functools.partial(dcn_forward, tb=256))
    prob, logit = fwd(concat_all, kparams)
    jax.block_until_ready((prob, logit))

    # sanity + numerical check against the f32 reference (bf16 MXU tower -> loose tol)
    prob_ref, logit_ref = dcn_reference(concat_all, params)
    assert prob.shape == (B, 1) and logit.shape == (B, 1)
    assert bool(jnp.all((prob >= 0.0) & (prob <= 1.0)))
    assert bool(jnp.max(jnp.abs(logit - logit_ref)) < 5e-2), "logit mismatch"
    assert bool(jnp.max(jnp.abs(prob - prob_ref)) < 2e-2), "prob mismatch"
    print("KERNEL_OK")
</pallas_src>

<mosaic_0001>
module attributes {stable_mosaic.version = 11 : i64} {
  func.func @dcn_kernel(%arg0: i32, %arg1: memref<16x64xf32, #tpu.memory_space<vmem>>, %arg2: memref<1x64xf32, #tpu.memory_space<vmem>>, %arg3: memref<64x512xbf16, #tpu.memory_space<vmem>>, %arg4: memref<1x512xf32, #tpu.memory_space<vmem>>, %arg5: memref<512x256xbf16, #tpu.memory_space<vmem>>, %arg6: memref<1x256xf32, #tpu.memory_space<vmem>>, %arg7: memref<256x128xbf16, #tpu.memory_space<vmem>>, %arg8: memref<1x128xf32, #tpu.memory_space<vmem>>, %arg9: memref<1x64xf32, #tpu.memory_space<vmem>>, %arg10: memref<1x128xf32, #tpu.memory_space<vmem>>, %arg11: memref<1x1xf32, #tpu.memory_space<vmem>>, %arg12: memref<16x2xf32, #tpu.memory_space<vmem>>) attributes {dimension_semantics = [#tpu.dimension_semantics<parallel>], iteration_bounds = array<i64: 1>, scalar_prefetch = 0 : i64, scratch_operands = 0 : i64, tpu.core_type = #tpu.core_type<tc>, window_params = [{transform_indices = @transform_0, window_bounds = array<i64: 16, 64>}, {pipeline_mode = #tpu.pipeline_mode<synchronous>, transform_indices = @transform_1, window_bounds = array<i64: 1, 64>}, {pipeline_mode = #tpu.pipeline_mode<synchronous>, transform_indices = @transform_2, window_bounds = array<i64: 64, 512>}, {pipeline_mode = #tpu.pipeline_mode<synchronous>, transform_indices = @transform_3, window_bounds = array<i64: 1, 512>}, {pipeline_mode = #tpu.pipeline_mode<synchronous>, transform_indices = @transform_4, window_bounds = array<i64: 512, 256>}, {pipeline_mode = #tpu.pipeline_mode<synchronous>, transform_indices = @transform_5, window_bounds = array<i64: 1, 256>}, {pipeline_mode = #tpu.pipeline_mode<synchronous>, transform_indices = @transform_6, window_bounds = array<i64: 256, 128>}, {pipeline_mode = #tpu.pipeline_mode<synchronous>, transform_indices = @transform_7, window_bounds = array<i64: 1, 128>}, {pipeline_mode = #tpu.pipeline_mode<synchronous>, transform_indices = @transform_8, window_bounds = array<i64: 1, 64>}, {pipeline_mode = #tpu.pipeline_mode<synchronous>, transform_indices = @transform_9, window_bounds = array<i64: 1, 128>}, {pipeline_mode = #tpu.pipeline_mode<synchronous>, transform_indices = @transform_10, window_bounds = array<i64: 1, 1>}, {transform_indices = @transform_11, window_bounds = array<i64: 16, 2>}]} {
    %c0 = arith.constant 0 : index
    %c0_0 = arith.constant 0 : index
    %0 = vector.load %arg1[%c0, %c0_0] : memref<16x64xf32, #tpu.memory_space<vmem>>, vector<16x64xf32>
    %c0_1 = arith.constant 0 : index
    %c0_2 = arith.constant 0 : index
    %1 = vector.load %arg2[%c0_1, %c0_2] : memref<1x64xf32, #tpu.memory_space<vmem>>, vector<1x64xf32>
    %2 = vector.broadcast %1 : vector<1x64xf32> to vector<16x64xf32>
    %3 = arith.mulf %0, %2 : vector<16x64xf32>
    %cst = arith.constant dense<0.000000e+00> : vector<16xf32>
    %4 = vector.multi_reduction <add>, %3, %cst [1] : vector<16x64xf32> to vector<16xf32>
    %5 = vector.shape_cast %4 : vector<16xf32> to vector<16x1xf32>
    %c0_3 = arith.constant 0 : index
    %c0_4 = arith.constant 0 : index
    %6 = vector.load %arg9[%c0_3, %c0_4] : memref<1x64xf32, #tpu.memory_space<vmem>>, vector<1x64xf32>
    %7 = vector.broadcast %6 : vector<1x64xf32> to vector<16x64xf32>
    %8 = arith.mulf %0, %7 : vector<16x64xf32>
    %cst_5 = arith.constant dense<0.000000e+00> : vector<16xf32>
    %9 = vector.multi_reduction <add>, %8, %cst_5 [1] : vector<16x64xf32> to vector<16xf32>
    %10 = vector.shape_cast %9 : vector<16xf32> to vector<16x1xf32>
    %cst_6 = arith.constant 1.000000e+00 : f32
    %11 = vector.broadcast %cst_6 : f32 to vector<16x1xf32>
    %12 = arith.addf %5, %11 : vector<16x1xf32>
    %13 = arith.mulf %12, %10 : vector<16x1xf32>
    %14 = arith.truncf %0 : vector<16x64xf32> to vector<16x64xbf16>
    %c0_7 = arith.constant 0 : index
    %c0_8 = arith.constant 0 : index
    %15 = vector.load %arg3[%c0_7, %c0_8] : memref<64x512xbf16, #tpu.memory_space<vmem>>, vector<64x512xbf16>
    %cst_9 = arith.constant dense<0.000000e+00> : vector<16x512xf32>
    %16 = tpu.matmul %14, %15, %cst_9 {dimension_numbers = #tpu.dot_dimension_numbers<[1], [0], [0], [1], [0, 0, 1, 1], [], []>} : vector<16x64xbf16>, vector<64x512xbf16>, vector<16x512xf32> -> vector<16x512xf32>
    %c0_10 = arith.constant 0 : index
    %c0_11 = arith.constant 0 : index
    %17 = vector.load %arg4[%c0_10, %c0_11] : memref<1x512xf32, #tpu.memory_space<vmem>>, vector<1x512xf32>
    %18 = vector.broadcast %17 : vector<1x512xf32> to vector<16x512xf32>
    %19 = arith.addf %16, %18 : vector<16x512xf32>
    %cst_12 = arith.constant 0.000000e+00 : f32
    %20 = vector.broadcast %cst_12 : f32 to vector<16x512xf32>
    %21 = arith.maximumf %19, %20 : vector<16x512xf32>
    %22 = arith.truncf %21 : vector<16x512xf32> to vector<16x512xbf16>
    %c0_13 = arith.constant 0 : index
    %c0_14 = arith.constant 0 : index
    %23 = vector.load %arg5[%c0_13, %c0_14] : memref<512x256xbf16, #tpu.memory_space<vmem>>, vector<512x256xbf16>
    %cst_15 = arith.constant dense<0.000000e+00> : vector<16x256xf32>
    %24 = tpu.matmul %22, %23, %cst_15 {dimension_numbers = #tpu.dot_dimension_numbers<[1], [0], [0], [1], [0, 0, 1, 1], [], []>} : vector<16x512xbf16>, vector<512x256xbf16>, vector<16x256xf32> -> vector<16x256xf32>
    %c0_16 = arith.constant 0 : index
    %c0_17 = arith.constant 0 : index
    %25 = vector.load %arg6[%c0_16, %c0_17] : memref<1x256xf32, #tpu.memory_space<vmem>>, vector<1x256xf32>
    %26 = vector.broadcast %25 : vector<1x256xf32> to vector<16x256xf32>
    %27 = arith.addf %24, %26 : vector<16x256xf32>
    %cst_18 = arith.constant 0.000000e+00 : f32
    %28 = vector.broadcast %cst_18 : f32 to vector<16x256xf32>
    %29 = arith.maximumf %27, %28 : vector<16x256xf32>
    %30 = arith.truncf %29 : vector<16x256xf32> to vector<16x256xbf16>
    %c0_19 = arith.constant 0 : index
    %c0_20 = arith.constant 0 : index
    %31 = vector.load %arg7[%c0_19, %c0_20] : memref<256x128xbf16, #tpu.memory_space<vmem>>, vector<256x128xbf16>
    %cst_21 = arith.constant dense<0.000000e+00> : vector<16x128xf32>
    %32 = tpu.matmul %30, %31, %cst_21 {dimension_numbers = #tpu.dot_dimension_numbers<[1], [0], [0], [1], [0, 0, 1, 1], [], []>} : vector<16x256xbf16>, vector<256x128xbf16>, vector<16x128xf32> -> vector<16x128xf32>
    %c0_22 = arith.constant 0 : index
    %c0_23 = arith.constant 0 : index
    %33 = vector.load %arg8[%c0_22, %c0_23] : memref<1x128xf32, #tpu.memory_space<vmem>>, vector<1x128xf32>
    %34 = vector.broadcast %33 : vector<1x128xf32> to vector<16x128xf32>
    %35 = arith.addf %32, %34 : vector<16x128xf32>
    %cst_24 = arith.constant 0.000000e+00 : f32
    %36 = vector.broadcast %cst_24 : f32 to vector<16x128xf32>
    %37 = arith.maximumf %35, %36 : vector<16x128xf32>
    %c0_25 = arith.constant 0 : index
    %c0_26 = arith.constant 0 : index
    %38 = vector.load %arg10[%c0_25, %c0_26] : memref<1x128xf32, #tpu.memory_space<vmem>>, vector<1x128xf32>
    %39 = vector.broadcast %38 : vector<1x128xf32> to vector<16x128xf32>
    %40 = arith.mulf %37, %39 : vector<16x128xf32>
    %cst_27 = arith.constant dense<0.000000e+00> : vector<16xf32>
    %41 = vector.multi_reduction <add>, %40, %cst_27 [1] : vector<16x128xf32> to vector<16xf32>
    %42 = vector.shape_cast %41 : vector<16xf32> to vector<16x1xf32>
    %43 = arith.addf %13, %42 : vector<16x1xf32>
    %c0_28 = arith.constant 0 : index
    %c0_29 = arith.constant 0 : index
    %44 = vector.load %arg11[%c0_28, %c0_29] : memref<1x1xf32, #tpu.memory_space<vmem>>, vector<1x1xf32>
    %45 = vector.broadcast %44 : vector<1x1xf32> to vector<16x1xf32>
    %46 = arith.addf %43, %45 : vector<16x1xf32>
    %47 = arith.negf %46 : vector<16x1xf32>
    %48 = math.exp %47 : vector<16x1xf32>
    %cst_30 = arith.constant 1.000000e+00 : f32
    %49 = vector.broadcast %cst_30 : f32 to vector<16x1xf32>
    %50 = arith.addf %49, %48 : vector<16x1xf32>
    %51 = arith.divf %49, %50 : vector<16x1xf32>
    %52 = tpu.concatenate %51, %46 in 1 : vector<16x1xf32>, vector<16x1xf32> -> vector<16x2xf32>
    %c0_31 = arith.constant 0 : index
    %c0_32 = arith.constant 0 : index
    %53 = vector.load %arg12[%c0_31, %c0_32] : memref<16x2xf32, #tpu.memory_space<vmem>>, vector<16x2xf32>
    tpu.vector_store %arg12[%c0_31, %c0_32], %52 {strides = array<i32>} : memref<16x2xf32, #tpu.memory_space<vmem>>, vector<16x2xf32>,
    return
  }
  func.func @transform_0(%arg0: i32) -> (i32, i32) {
    %c0_i32 = arith.constant 0 : i32
    %c0_i32_0 = arith.constant 0 : i32
    return %arg0, %c0_i32 : i32, i32
  }
  func.func @transform_1(%arg0: i32) -> (i32, i32) {
    %c0_i32 = arith.constant 0 : i32
    %c0_i32_0 = arith.constant 0 : i32
    %c0_i32_1 = arith.constant 0 : i32
    return %c0_i32, %c0_i32_0 : i32, i32
  }
  func.func @transform_2(%arg0: i32) -> (i32, i32) {
    %c0_i32 = arith.constant 0 : i32
    %c0_i32_0 = arith.constant 0 : i32
    %c0_i32_1 = arith.constant 0 : i32
    return %c0_i32, %c0_i32_0 : i32, i32
  }
  func.func @transform_3(%arg0: i32) -> (i32, i32) {
    %c0_i32 = arith.constant 0 : i32
    %c0_i32_0 = arith.constant 0 : i32
    %c0_i32_1 = arith.constant 0 : i32
    return %c0_i32, %c0_i32_0 : i32, i32
  }
  func.func @transform_4(%arg0: i32) -> (i32, i32) {
    %c0_i32 = arith.constant 0 : i32
    %c0_i32_0 = arith.constant 0 : i32
    %c0_i32_1 = arith.constant 0 : i32
    return %c0_i32, %c0_i32_0 : i32, i32
  }
  func.func @transform_5(%arg0: i32) -> (i32, i32) {
    %c0_i32 = arith.constant 0 : i32
    %c0_i32_0 = arith.constant 0 : i32
    %c0_i32_1 = arith.constant 0 : i32
    return %c0_i32, %c0_i32_0 : i32, i32
  }
  func.func @transform_6(%arg0: i32) -> (i32, i32) {
    %c0_i32 = arith.constant 0 : i32
    %c0_i32_0 = arith.constant 0 : i32
    %c0_i32_1 = arith.constant 0 : i32
    return %c0_i32, %c0_i32_0 : i32, i32
  }
  func.func @transform_7(%arg0: i32) -> (i32, i32) {
    %c0_i32 = arith.constant 0 : i32
    %c0_i32_0 = arith.constant 0 : i32
    %c0_i32_1 = arith.constant 0 : i32
    return %c0_i32, %c0_i32_0 : i32, i32
  }
  func.func @transform_8(%arg0: i32) -> (i32, i32) {
    %c0_i32 = arith.constant 0 : i32
    %c0_i32_0 = arith.constant 0 : i32
    %c0_i32_1 = arith.constant 0 : i32
    return %c0_i32, %c0_i32_0 : i32, i32
  }
  func.func @transform_9(%arg0: i32) -> (i32, i32) {
    %c0_i32 = arith.constant 0 : i32
    %c0_i32_0 = arith.constant 0 : i32
    %c0_i32_1 = arith.constant 0 : i32
    return %c0_i32, %c0_i32_0 : i32, i32
  }
  func.func @transform_10(%arg0: i32) -> (i32, i32) {
    %c0_i32 = arith.constant 0 : i32
    %c0_i32_0 = arith.constant 0 : i32
    %c0_i32_1 = arith.constant 0 : i32
    return %c0_i32, %c0_i32_0 : i32, i32
  }
  func.func @transform_11(%arg0: i32) -> (i32, i32) {
    %c0_i32 = arith.constant 0 : i32
    %c0_i32_0 = arith.constant 0 : i32
    return %arg0, %c0_i32 : i32, i32
  }
}

</mosaic_0001>

<bundles_post_ra>
// kernel: dcn_forward.1
= control target key start
LH: loop header
LB: loop body
LE: loop exit
PB: predicated region body
PF: predicated region fallthrough
CT: control target
= control target key end

     0   :  { %s1591_s0 = inlined_call_operand.vmem [shape: f32[16,64], index: 0, kind: input, shape index: {}]   ;;  %s1592_s1 = inlined_call_operand.vmem [shape: f32[1,64], index: 1, kind: input, shape index: {}]   ;;  %s1593_s2 = inlined_call_operand.hbm [shape: bf16[64,512], index: 2, kind: input, shape index: {}]   ;;  %s1594_s3 = inlined_call_operand.vmem [shape: f32[1,512], index: 3, kind: input, shape index: {}]   ;;  %s1595_s4 = inlined_call_operand.hbm [shape: bf16[512,256], index: 4, kind: input, shape index: {}]   ;;  %s1596_s5 = inlined_call_operand.vmem [shape: f32[1,256], index: 5, kind: input, shape index: {}]   ;;  %s1597_s6 = inlined_call_operand.hbm [shape: bf16[256,128], index: 6, kind: input, shape index: {}]   ;;  %s1598_s7 = inlined_call_operand.vmem [shape: f32[1,128], index: 7, kind: input, shape index: {}]   ;;  %s1599_s8 = inlined_call_operand.vmem [shape: f32[1,64], index: 8, kind: input, shape index: {}]   ;;  %s1600_s9 = inlined_call_operand.vmem [shape: f32[1,128], index: 9, kind: input, shape index: {}]   ;;  %s1601_s10 = inlined_call_operand.<no memory space> [shape: f32[1,1], index: 10, kind: input, shape index: {}]   ;;  %s1602_s11 = inlined_call_operand.vmem [shape: f32[16,2], index: 11, kind: output, shape index: {}]  }
   0x1   :  { %v16_v0 = vstv %s1601_s10 }
   0x2   :  { %17 = vst [vmem:[#allocation2] sm:$0x1] %v16_v0 }
   0x3   :  { %18 = vsyncpa [#allocation4], 0 }
   0x4   :  { %19 = vsyncpa [#allocation6], 0  ;;  %s1421_s19 = smov [#allocation5]   ;;  %s1351_s23 = scalar_lea.hbm %s1595_s4, 8192 }
   0x5   :  { %s43_s20 = sshll.u32 %s1421_s19, 4  ;;  %p1352_p0 = scmp.ne.s32.totalorder %s1595_s4, %s1351_s23  ;;  %s44_s20 = int_to_ptr.vmem [resolvable:$true] %s43_s20 }
   0x6   :  { %p1355_p1 = scmp.lt.u32.totalorder %s1351_s23, %s1595_s4 }
   0x8   :  { %p1357_p2 = pnand %p1355_p1, %p1352_p0 }
   0xa   :  { %1360 = shalt.err (!%p1357_p2)
}
   0xb   :  { %s1361_s10 = scalar_lea.vmem %s44_s20, 8192  ;;  %p1366_p4 = scmp.lt.s32.totalorder %s44_s20, %s44_s20 }
   0xc   :  { %p1362_p3 = scmp.ne.s32.totalorder %s44_s20, %s1361_s10  ;;  %p1367_p5 = scmp.lt.s32.totalorder %s1361_s10, %s1361_s10 }
   0xe   :  { %p1368_p6 = por %p1367_p5, %p1366_p4 }
  0x10   :  { %p1369_p7 = pnand %p1368_p6, %p1362_p3 }
  0x12   :  { %1372 = shalt.err (!%p1369_p7)
}
  0x13   :  { %s1422_s28 = smov 128   ;;  %s1423_s29 = smov 8  }
  0x14   :  { %49 = dma.hbm_to_vmem [thread:$0]  %s1595_s4, 8192, %s44_s20, [#allocation6], %s1422_s28, %s1422_s28, %s1423_s29  }
  0x15   :  { %s1424_s13 = smov [#allocation3]   ;;  %s1373_s17 = scalar_lea.hbm %s1593_s2, 2048 }
  0x16   :  { %s29_s14 = sshll.u32 %s1424_s13, 4  ;;  %p1374_p8 = scmp.ne.s32.totalorder %s1593_s2, %s1373_s17  ;;  %s30_s14 = int_to_ptr.vmem [resolvable:$true] %s29_s14 }
  0x17   :  { %p1377_p9 = scmp.lt.u32.totalorder %s1373_s17, %s1593_s2 }
  0x19   :  { %p1379_p10 = pnand %p1377_p9, %p1374_p8 }
  0x1b   :  { %1382 = shalt.err (!%p1379_p10)
}
  0x1c   :  { %s1383_s23 = scalar_lea.vmem %s30_s14, 2048  ;;  %p1388_p12 = scmp.lt.s32.totalorder %s30_s14, %s30_s14 }
  0x1d   :  { %p1384_p11 = scmp.ne.s32.totalorder %s30_s14, %s1383_s23  ;;  %p1389_p13 = scmp.lt.s32.totalorder %s1383_s23, %s1383_s23 }
  0x1f   :  { %p1390_p0 = por %p1389_p13, %p1388_p12 }
  0x21   :  { %p1391_p1 = pnand %p1390_p0, %p1384_p11 }
  0x23   :  { %1394 = shalt.err (!%p1391_p1)
}
  0x24   :  { %s1425_s4 = smov 256   ;;  %s1426_s20 = smov 16  }
  0x25   :  { %35 = dma.hbm_to_vmem [thread:$0]  %s1593_s2, 2048, %s30_s14, [#allocation4], %s1425_s4, %s1425_s4, %s1426_s20  }
  0x26   :  { %s1427_s26 = smov [#allocation7]   ;;  %s1395_s29 = scalar_lea.hbm %s1597_s6, 2048 }
  0x27   :  { %s57_s27 = sshll.u32 %s1427_s26, 4  ;;  %p1396_p2 = scmp.ne.s32.totalorder %s1597_s6, %s1395_s29  ;;  %s58_s27 = int_to_ptr.vmem [resolvable:$true] %s57_s27 }
  0x28   :  { %p1399_p3 = scmp.lt.u32.totalorder %s1395_s29, %s1597_s6 }
  0x2a   :  { %p1401_p4 = pnand %p1399_p3, %p1396_p2 }
  0x2c   :  { %1404 = shalt.err (!%p1401_p4)
}
  0x2d   :  { %s1405_s16 = scalar_lea.vmem %s58_s27, 2048  ;;  %p1410_p6 = scmp.lt.s32.totalorder %s58_s27, %s58_s27 }
  0x2e   :  { %p1406_p5 = scmp.ne.s32.totalorder %s58_s27, %s1405_s16  ;;  %p1411_p7 = scmp.lt.s32.totalorder %s1405_s16, %s1405_s16 }
  0x30   :  { %p1412_p8 = por %p1411_p7, %p1410_p6 }
  0x32   :  { %p1413_p9 = pnand %p1412_p8, %p1406_p5 }
  0x34   :  { %1416 = shalt.err (!%p1413_p9)
}
  0x35   :  { %s1428_s2 = smov 64   ;;  %s1429_s14 = smov 4  }
  0x36   :  { %63 = dma.hbm_to_vmem [thread:$0]  %s1597_s6, 2048, %s58_s27, [#allocation6], %s1428_s2, %s1428_s2, %s1429_s14  }
  0x37   :  { %1417 = dma.done.wait [#allocation4], 2048  }
  0x38   :  { %1418 = vsyncadd [#allocation4], 4294965248 }
  0x39   :  { %1419 = dma.done.wait [#allocation6], 10240  }
  0x3a   :  { %1420 = vsyncadd [#allocation6], 4294957056  ;;  %v1430_v1 = vmov 0   ;;  %v1207_v2 = vld [vmem:[#allocation3 + $0x4] ss:$16 sps:$4 sm:$0xff]   ;;  %vm93_vm0 = vcmask 523264  }
  0x3b   :  { %273 = vmatprep.mubr.bf16.mxu0 %v1430_v1  ;;  %v1209_v3 = vld [vmem:[#allocation3] ss:$16 sps:$4 sm:$0xff]   ;;  %241 = vmatprep.subr.bf16.mxu0 %v1207_v2  ;;  %v1210_v4 = vld [vmem:[#allocation3 + $0x24] ss:$16 sps:$4 sm:$0xff]   ;;  %v1221_v12 = vld [vmem:[#allocation3 + $0xc] ss:$16 sps:$4 sm:$0xff]  }
  0x3c   :  { %242 = vmatpush1.bf16.msra.mxu0 %v1209_v3  ;;  %v1212_v5 = vld [vmem:[#allocation3 + $0x20] ss:$16 sps:$4 sm:$0xff]   ;;  %v1213_v6 = vld [vmem:[#allocation3 + $0x44] ss:$16 sps:$4 sm:$0xff]   ;;  %v1219_v17 = vld [vmem:[#allocation3 + $0x8] ss:$16 sps:$4 sm:$0xff]  }
  0x3d   :  { %243 = vmatprep.subr.bf16.mxu0 %v1210_v4  ;;  %v1215_v7 = vld [vmem:[#allocation3 + $0x40] ss:$16 sps:$4 sm:$0xff]   ;;  %v1216_v8 = vld [vmem:[#allocation3 + $0x64] ss:$16 sps:$4 sm:$0xff]   ;;  %v1224_v18 = vld [vmem:[#allocation3 + $0x2c] ss:$16 sps:$4 sm:$0xff]  }
  0x3e   :  { %v1218_v9 = vld [vmem:[#allocation3 + $0x60] ss:$16 sps:$4 sm:$0xff]   ;;  %v1539_v11 = vld [vmem:[%s1591_s0 + $0x8] sm:$0xff]  ;;  %v1234_v15 = vld [vmem:[#allocation5 + $0x14] ss:$8 sps:$4 sm:$0xff]   ;;  %vm1049_vm1 = vcmask 7168  }
  0x3f   :  { %v1534_v10 = vld [vmem:[%s1591_s0] sm:$0xff]  ;;  %v1236_v19 = vld [vmem:[#allocation5 + $0x10] ss:$8 sps:$4 sm:$0xff]   ;;  %vm1052_vm2 = vcmask 15360  }
  0x40   :  { %244 = vmatpush1.bf16.msra.mxu0 %v1212_v5  ;;  %v1231_v13 = vld [vmem:[#allocation5 + $0x4] ss:$8 sps:$4 sm:$0xff]   ;;  %v1233_v14 = vld [vmem:[#allocation5] ss:$8 sps:$4 sm:$0xff]   ;;  %v119_v16 = vpack.c.bf16 %v1539_v11, %v1534_v10  ;;  %v1240_v24 = vld [vmem:[#allocation5 + $0x34] ss:$8 sps:$4 sm:$0xff]  }
  0x41   :  { %245 = vmatprep.subr.bf16.mxu0 %v1213_v6  ;;  %735 = vmatprep.subr.bf16.mxu1 %v1231_v13  ;;  %v1237_v20 = vld [vmem:[#allocation5 + $0x24] ss:$8 sps:$4 sm:$0xff]   ;;  %v1222_v21 = vld [vmem:[#allocation3 + $0x28] ss:$16 sps:$4 sm:$0xff]   ;;  %v1249_v32 = vld [vmem:[#allocation5 + $0x54] ss:$8 sps:$4 sm:$0xff]  }
  0x42   :  { %736 = vmatpush1.bf16.msra.mxu1 %v1233_v14  ;;  %v1227_v22 = vld [vmem:[#allocation3 + $0x4c] ss:$16 sps:$4 sm:$0xff]   ;;  %v1239_v23 = vld [vmem:[#allocation5 + $0x20] ss:$8 sps:$4 sm:$0xff]   ;;  %v1242_v27 = vld [vmem:[#allocation5 + $0x30] ss:$8 sps:$4 sm:$0xff]  }
  0x43   :  { %737 = vmatprep.subr.bf16.mxu1 %v1234_v15  ;;  %v1225_v25 = vld [vmem:[#allocation3 + $0x48] ss:$16 sps:$4 sm:$0xff]   ;;  %v1230_v26 = vld [vmem:[#allocation3 + $0x6c] ss:$16 sps:$4 sm:$0xff]  }
  0x44   :  { %246 = vmatpush1.bf16.msra.mxu0 %v1215_v7  ;;  %v1243_v28 = vld [vmem:[#allocation5 + $0x44] ss:$8 sps:$4 sm:$0xff]   ;;  %v1228_v29 = vld [vmem:[#allocation3 + $0x68] ss:$16 sps:$4 sm:$0xff]   ;;  %v1253_v34 = vld [vmem:[#allocation5 + $0x114] ss:$8 sps:$4 sm:$0xff]  }
  0x45   :  { %247 = vmatprep.subr.bf16.mxu0 %v1216_v8  ;;  %v1247_v30 = vld [vmem:[#allocation5 + $0x104] ss:$8 sps:$4 sm:$0xff]   ;;  %v1248_v31 = vld [vmem:[#allocation5 + $0x40] ss:$8 sps:$4 sm:$0xff]   ;;  %v1254_v35 = vld [vmem:[#allocation5 + $0x50] ss:$8 sps:$4 sm:$0xff]  }
  0x46   :  { %738 = vmatpush1.bf16.msra.mxu1 %v1236_v19  ;;  %v1245_v33 = vld [vmem:[#allocation5 + $0x100] ss:$8 sps:$4 sm:$0xff]   ;;  %v1255_v36 = vld [vmem:[#allocation5 + $0x64] ss:$8 sps:$4 sm:$0xff]   ;;  %v1251_v37 = vld [vmem:[#allocation5 + $0x110] ss:$8 sps:$4 sm:$0xff]  }
  0x47   :  { %739 = vmatprep.subr.bf16.mxu1 %v1237_v20  ;;  %v1259_v38 = vld [vmem:[#allocation5 + $0x124] ss:$8 sps:$4 sm:$0xff]   ;;  %v1260_v39 = vld [vmem:[#allocation5 + $0x60] ss:$8 sps:$4 sm:$0xff]   ;;  %v1261_v40 = vld [vmem:[#allocation5 + $0x74] ss:$8 sps:$4 sm:$0xff]  }
  0x48   :  { %248 = vmatpush1.bf16.msra.mxu0 %v1218_v9  ;;  %v1257_v41 = vld [vmem:[#allocation5 + $0x120] ss:$8 sps:$4 sm:$0xff]   ;;  %v1265_v42 = vld [vmem:[#allocation5 + $0x134] ss:$8 sps:$4 sm:$0xff]   ;;  %v1266_v43 = vld [vmem:[#allocation5 + $0x70] ss:$8 sps:$4 sm:$0xff]  }
  0x49   :  { %284 = vmatprep.subr.bf16.mxu0 %v1221_v12  ;;  %v1263_v44 = vld [vmem:[#allocation5 + $0x130] ss:$8 sps:$4 sm:$0xff]   ;;  %v1267_v45 = vld [vmem:[#allocation5 + $0x84] ss:$8 sps:$4 sm:$0xff]   ;;  %v1272_v47 = vld [vmem:[#allocation5 + $0x80] ss:$8 sps:$4 sm:$0xff]  }
  0x4a   :  { %740 = vmatpush1.bf16.msra.mxu1 %v1239_v23  ;;  %v1271_v46 = vld [vmem:[#allocation5 + $0x144] ss:$8 sps:$4 sm:$0xff]   ;;  %v1273_v48 = vld [vmem:[#allocation5 + $0x94] ss:$8 sps:$4 sm:$0xff]   ;;  %v1269_v49 = vld [vmem:[#allocation5 + $0x140] ss:$8 sps:$4 sm:$0xff]  }
  0x4b   :  { %1079 = vmatmul.mubr.msk.bf16.vlgmr.msra.gmra.mrb[0].mxu0 %vm93_vm0, %v119_v16  ;;  %741 = vmatprep.subr.bf16.mxu1 %v1240_v24  ;;  %v1277_v50 = vld [vmem:[#allocation5 + $0x154] ss:$8 sps:$4 sm:$0xff]   ;;  %v1278_v51 = vld [vmem:[#allocation5 + $0x90] ss:$8 sps:$4 sm:$0xff]   ;;  %v1279_v52 = vld [vmem:[#allocation5 + $0xa4] ss:$8 sps:$4 sm:$0xff]   ;;  %v138_v24 = vlaneseq }
  0x4c   :  { %285 = vmatpush1.bf16.msra.mxu0 %v1219_v17  ;;  %316 = vmatprep.mubr.bf16.mxu0 %v1430_v1  ;;  %v1275_v53 = vld [vmem:[#allocation5 + $0x150] ss:$8 sps:$4 sm:$0xff]   ;;  %v1283_v54 = vld [vmem:[#allocation5 + $0x164] ss:$8 sps:$4 sm:$0xff]   ;;  %v1284_v55 = vld [vmem:[#allocation5 + $0xa0] ss:$8 sps:$4 sm:$0xff]  }
  0x4d   :  { %286 = vmatprep.subr.bf16.mxu0 %v1224_v18  ;;  %v1285_v56 = vld [vmem:[#allocation5 + $0xb4] ss:$8 sps:$4 sm:$0xff]   ;;  %v1281_v57 = vld [vmem:[#allocation5 + $0x160] ss:$8 sps:$4 sm:$0xff]   ;;  %v1290_v59 = vld [vmem:[#allocation5 + $0xb0] ss:$8 sps:$4 sm:$0xff]  }
  0x4e   :  { %742 = vmatpush1.bf16.msra.mxu1 %v1242_v27  ;;  %v1289_v58 = vld [vmem:[#allocation5 + $0x174] ss:$8 sps:$4 sm:$0xff]   ;;  %v1291_v60 = vld [vmem:[#allocation5 + $0xc4] ss:$8 sps:$4 sm:$0xff]   ;;  %v1287_v61 = vld [vmem:[#allocation5 + $0x170] ss:$8 sps:$4 sm:$0xff]  }
  0x4f   :  { %743 = vmatprep.subr.bf16.mxu1 %v1243_v28  ;;  %v1295_v62 = vld [vmem:[#allocation5 + $0x184] ss:$8 sps:$4 sm:$0xff]   ;;  %v1296_v63 = vld [vmem:[#allocation5 + $0xc0] ss:$8 sps:$4 sm:$0xff]   ;;  %v1297_v0 = vld [vmem:[#allocation5 + $0xd4] ss:$8 sps:$4 sm:$0xff]  }
  0x50   :  { %287 = vmatpush1.bf16.msra.mxu0 %v1222_v21  ;;  %v1293_v1 = vld [vmem:[#allocation5 + $0x180] ss:$8 sps:$4 sm:$0xff]   ;;  %v1301_v2 = vld [vmem:[#allocation5 + $0x194] ss:$8 sps:$4 sm:$0xff]   ;;  %v1299_v3 = vld [vmem:[#allocation5 + $0x190] ss:$8 sps:$4 sm:$0xff]  }
  0x51   :  { %288 = vmatprep.subr.bf16.mxu0 %v1227_v22  ;;  %v1302_v4 = vld [vmem:[#allocation5 + $0xd0] ss:$8 sps:$4 sm:$0xff]   ;;  %v1303_v5 = vld [vmem:[#allocation5 + $0xe4] ss:$8 sps:$4 sm:$0xff]   ;;  %v1305_v7 = vld [vmem:[#allocation5 + $0x1a0] ss:$8 sps:$4 sm:$0xff]  }
  0x52   :  { %744 = vmatpush1.bf16.msra.mxu1 %v1248_v31  ;;  %v1307_v6 = vld [vmem:[#allocation5 + $0x1a4] ss:$8 sps:$4 sm:$0xff]   ;;  %v1308_v8 = vld [vmem:[#allocation5 + $0xe0] ss:$8 sps:$4 sm:$0xff]   ;;  %v1309_v9 = vld [vmem:[#allocation5 + $0xf4] ss:$8 sps:$4 sm:$0xff]  }
  0x53   :  { %745 = vmatprep.subr.bf16.mxu1 %v1249_v32  ;;  %v1313_v12 = vld [vmem:[#allocation5 + $0x1b4] ss:$8 sps:$4 sm:$0xff]   ;;  %v1311_v13 = vld [vmem:[#allocation5 + $0x1b0] ss:$8 sps:$4 sm:$0xff]   ;;  %v1317_v15 = vld [vmem:[#allocation5 + $0x1c4] ss:$8 sps:$4 sm:$0xff]  }
  0x54   :  { %289 = vmatpush1.bf16.msra.mxu0 %v1225_v25  ;;  %v1314_v14 = vld [vmem:[#allocation5 + $0xf0] ss:$8 sps:$4 sm:$0xff]   ;;  %v1320_v17 = vld [vmem:[#allocation5 + $0x1d4] ss:$8 sps:$4 sm:$0xff]   ;;  %v1323_v19 = vld [vmem:[#allocation5 + $0x1e4] ss:$8 sps:$4 sm:$0xff]  }
  0x55   :  { %290 = vmatprep.subr.bf16.mxu0 %v1230_v26  ;;  %v1318_v18 = vld [vmem:[#allocation5 + $0x1d0] ss:$8 sps:$4 sm:$0xff]   ;;  %v1321_v20 = vld [vmem:[#allocation5 + $0x1e0] ss:$8 sps:$4 sm:$0xff]   ;;  %v1326_v21 = vld [vmem:[#allocation5 + $0x1f4] ss:$8 sps:$4 sm:$0xff]  }
  0x56   :  { %746 = vmatpush1.bf16.msra.mxu1 %v1254_v35  ;;  %v1324_v22 = vld [vmem:[#allocation5 + $0x1f0] ss:$8 sps:$4 sm:$0xff]   ;;  %v1327_v23 = vld [vmem:[#allocation7 + $0x40] sm:$0xff]   ;;  %v1545_v25 = vshrl.u32 %v138_v24, 7 }
  0x57   :  { %747 = vmatprep.subr.bf16.mxu1 %v1255_v36  ;;  %v136_v27 = vld [vmem:[%s1594_s3] sm:$0xf] }
  0x58   :  { %291 = vmatpush1.bf16.msra.mxu0 %v1228_v29  ;;  %v140_v26 = vsub.s32 0, %v1545_v25  ;;  %v144_v28 = vsub.s32 1, %v1545_v25 }
  0x59   :  { %778 = vmatprep.subr.bf16.mxu0 %v1247_v30 }
  0x5a   :  { %748 = vmatpush1.bf16.msra.mxu1 %v1260_v39  ;;  %v141_v29 = vrot.slane %v136_v27, %v140_v26  ;;  %v145_v30 = vrot.slane %v136_v27, %v144_v28 }
  0x5b   :  { %1080 = vmatmul.mubr.msk.bf16.vlgmr.msra.gmra.mrb[4].mxu0 %vm93_vm0, %v119_v16  ;;  %749 = vmatprep.subr.bf16.mxu1 %v1261_v40  ;;  %v1315_v16 = vld [vmem:[#allocation5 + $0x1c0] ss:$8 sps:$4 sm:$0xff]  }
  0x5c   :  { %779 = vmatpush1.bf16.msra.mxu0 %v1245_v33 }
  0x5d   :  { %780 = vmatprep.subr.bf16.mxu0 %v1253_v34 }
  0x5e   :  { %750 = vmatpush1.bf16.msra.mxu1 %v1266_v43 }
  0x5f   :  { %751 = vmatprep.subr.bf16.mxu1 %v1267_v45  ;;  %v1328_v45 = vld [vmem:[#allocation7] sm:$0xff]  }
  0x60   :  { %781 = vmatpush1.bf16.msra.mxu0 %v1251_v37 }
  0x61   :  { %782 = vmatprep.subr.bf16.mxu0 %v1259_v38 }
  0x62   :  { %752 = vmatpush1.bf16.msra.mxu1 %v1272_v47  ;;  %v1329_v47 = vld [vmem:[#allocation7 + $0x48] sm:$0xff]  }
  0x63   :  { %753 = vmatprep.subr.bf16.mxu1 %v1273_v48  ;;  %v152_v48 = vsub.s32 3, %v1545_v25 }
  0x64   :  { %783 = vmatpush1.bf16.msra.mxu0 %v1257_v41 }
  0x65   :  { %784 = vmatprep.subr.bf16.mxu0 %v1265_v42 }
  0x66   :  { %754 = vmatpush1.bf16.msra.mxu1 %v1278_v51 }
  0x67   :  { %755 = vmatprep.subr.bf16.mxu1 %v1279_v52 }
  0x68   :  { %785 = vmatpush1.bf16.msra.mxu0 %v1263_v44 }
  0x69   :  { %786 = vmatprep.subr.bf16.mxu0 %v1271_v46  ;;  %v148_v46 = vsub.s32 2, %v1545_v25  ;;  %v1061_v25 = vld [vmem:[%s1592_s1] ss:$0 sm:$0xff] }
  0x6a   :  { %756 = vmatpush1.bf16.msra.mxu1 %v1284_v55 }
  0x6b   :  { %757 = vmatprep.subr.bf16.mxu1 %v1285_v56 }
  0x6c   :  { %787 = vmatpush1.bf16.msra.mxu0 %v1269_v49  ;;  %v149_v49 = vrot.slane %v136_v27, %v148_v46 }
  0x6d   :  { %788 = vmatprep.subr.bf16.mxu0 %v1277_v50  ;;  %v153_v50 = vrot.slane %v136_v27, %v152_v48 }
  0x6e   :  { %758 = vmatpush1.bf16.msra.mxu1 %v1290_v59 }
  0x6f   :  { %759 = vmatprep.subr.bf16.mxu1 %v1291_v60 }
  0x70   :  { %789 = vmatpush1.bf16.msra.mxu0 %v1275_v53 }
  0x71   :  { %790 = vmatprep.subr.bf16.mxu0 %v1283_v54 }
  0x72   :  { %760 = vmatpush1.bf16.msra.mxu1 %v1296_v63 }
  0x73   :  { %761 = vmatprep.subr.bf16.mxu1 %v1297_v0 }
  0x74   :  { %791 = vmatpush1.bf16.msra.mxu0 %v1281_v57 }
  0x75   :  { %792 = vmatprep.subr.bf16.mxu0 %v1289_v58 }
  0x76   :  { %762 = vmatpush1.bf16.msra.mxu1 %v1302_v4  ;;  %v1333_v4 = vld [vmem:[#allocation7 + $0x58] sm:$0xff]  }
  0x77   :  { %763 = vmatprep.subr.bf16.mxu1 %v1303_v5  ;;  %v1334_v5 = vld [vmem:[#allocation7 + $0x18] sm:$0xff]  }
  0x78   :  { %793 = vmatpush1.bf16.msra.mxu0 %v1287_v61 }
  0x79   :  { %794 = vmatprep.subr.bf16.mxu0 %v1295_v62 }
  0x7a   :  { %764 = vmatpush1.bf16.msra.mxu1 %v1308_v8  ;;  %v1337_v8 = vld [vmem:[#allocation7 + $0x68] sm:$0xff]  }
  0x7b   :  { %765 = vmatprep.subr.bf16.mxu1 %v1309_v9  ;;  %v1338_v9 = vld [vmem:[#allocation7 + $0x28] sm:$0xff]  }
  0x7c   :  { %795 = vmatpush1.bf16.msra.mxu0 %v1293_v1  ;;  %v1330_v1 = vld [vmem:[#allocation7 + $0x8] sm:$0xff]  }
  0x7d   :  { %796 = vmatprep.subr.bf16.mxu0 %v1301_v2  ;;  %v1331_v2 = vld [vmem:[#allocation7 + $0x50] sm:$0xff]  }
  0x7e   :  { %766 = vmatpush1.bf16.msra.mxu1 %v1314_v14  ;;  %v1341_v14 = vld [vmem:[#allocation7 + $0x78] sm:$0xff]  }
  0x7f   :  { %1166 = vmatprep.subr.bf16.mxu1 %v1327_v23 }
  0x80   :  { %797 = vmatpush1.bf16.msra.mxu0 %v1299_v3  ;;  %v1332_v3 = vld [vmem:[#allocation7 + $0x10] sm:$0xff]  }
  0x81   :  { %798 = vmatprep.subr.bf16.mxu0 %v1307_v6  ;;  %v1335_v6 = vld [vmem:[#allocation7 + $0x60] sm:$0xff]  }
  0x84   :  { %799 = vmatpush1.bf16.msra.mxu0 %v1305_v7  ;;  %v1336_v7 = vld [vmem:[#allocation7 + $0x20] sm:$0xff]  }
  0x85   :  { %800 = vmatprep.subr.bf16.mxu0 %v1313_v12  ;;  %v1339_v12 = vld [vmem:[#allocation7 + $0x70] sm:$0xff]  }
  0x88   :  { %801 = vmatpush1.bf16.msra.mxu0 %v1311_v13  ;;  %v1340_v13 = vld [vmem:[#allocation7 + $0x30] sm:$0xff]  }
  0x89   :  { %802 = vmatprep.subr.bf16.mxu0 %v1317_v15  ;;  %v1342_v15 = vld [vmem:[#allocation7 + $0x38] sm:$0xff]  }
  0x8c   :  { %803 = vmatpush1.bf16.msra.mxu0 %v1315_v16 }
  0x8d   :  { %804 = vmatprep.subr.bf16.mxu0 %v1320_v17 }
  0x90   :  { %805 = vmatpush1.bf16.msra.mxu0 %v1318_v18 }
  0x91   :  { %806 = vmatprep.subr.bf16.mxu0 %v1323_v19 }
  0x94   :  { %807 = vmatpush1.bf16.msra.mxu0 %v1321_v20  ;;  %v403_v20 = vld [vmem:[%s1596_s5] sm:$0x3] }
  0x95   :  { %808 = vmatprep.subr.bf16.mxu0 %v1326_v21  ;;  %v408_v21 = vrot.slane %v403_v20, %v140_v26 }
  0x98   :  { %809 = vmatpush1.bf16.msra.mxu0 %v1324_v22  ;;  %v412_v22 = vrot.slane %v403_v20, %v144_v28  ;;  %v91_v28 = vmul.f32 %v1061_v25, %v1534_v10 }
 0x11e   :  { %v275_v31 = vpop.f32.mrb[0].mxu0 }
 0x11f   :  { %v276_v32 = vadd.f32 %v275_v31, %v141_v29  ;;  %v277_v33 = vpop.f32.mrb[1].mxu0 }
 0x120   :  { %v278_v34 = vadd.f32 %v277_v33, %v145_v30  ;;  %v279_v35 = vpop.f32.mrb[2].mxu0 }
 0x121   :  { %v327_v36 = vmax.f32 %v276_v32, 0.0  ;;  %v280_v37 = vadd.f32 %v279_v35, %v141_v29  ;;  %v281_v38 = vpop.f32.mrb[3].mxu0 }
 0x122   :  { %v282_v39 = vadd.f32 %v281_v38, %v145_v30  ;;  %v328_v41 = vmax.f32 %v278_v34, 0.0 }
 0x123   :  { %v331_v40 = vmax.f32 %v280_v37, 0.0 }
 0x124   :  { %v332_v42 = vmax.f32 %v282_v39, 0.0 }
 0x125   :  { %v335_v43 = vpack.c.bf16 %v331_v40, %v327_v36 }
 0x126   :  { %v336_v44 = vpack.c.bf16 %v332_v42, %v328_v41 }
 0x128   :  { %767 = vmatprep.mubr.bf16.mxu1 %v336_v44  ;;  %v94_v44 = vsel %vm93_vm0, %v91_v28, 0.0 }
 0x129   :  { %768 = vmatmul.mubr.bf16.vlgmr.msra.gmra.mrb[0].mxu1 %v335_v43  ;;  %v1062_v43 = vld [vmem:[%s1599_s8] ss:$0 sm:$0xff]  ;;  %95 = vadd.xlane.f32.xlu0 %v94_v44 }
 0x12a   :  { %1167 = vmatpush3.bf16.msra.mxu1 %v1328_v45  ;;  %v107_v45 = vmul.f32 %v1062_v43, %v1534_v10 }
 0x12b   :  { %1168 = vmatprep.subr.bf16.mxu1 %v1329_v47  ;;  %v92_v47 = vmul.f32 %v1061_v25, %v1539_v11 }
 0x12c   :  { %v109_v46 = vsel %vm93_vm0, %v107_v45, 0.0 }
 0x12d   :  { %110 = vadd.xlane.f32.xlu1 %v109_v46  ;;  %v97_v48 = vsel %vm93_vm0, %v92_v47, 0.0 }
 0x12e   :  { %v318_v51 = vpop.f32.mrb[4].mxu0  ;;  %1169 = vmatpush3.bf16.msra.mxu1 %v1330_v1  ;;  %98 = vadd.xlane.f32.xlu0 %v97_v48 }
 0x12f   :  { %v319_v52 = vadd.f32 %v318_v51, %v149_v49  ;;  %v320_v53 = vpop.f32.mrb[5].mxu0  ;;  %1170 = vmatprep.subr.bf16.mxu1 %v1331_v2 }
 0x130   :  { %v321_v54 = vadd.f32 %v320_v53, %v153_v50  ;;  %v322_v55 = vpop.f32.mrb[6].mxu0 }
 0x131   :  { %v323_v56 = vadd.f32 %v322_v55, %v149_v49  ;;  %v324_v57 = vpop.f32.mrb[7].mxu0  ;;  %v329_v59 = vmax.f32 %v319_v52, 0.0  ;;  %v108_v49 = vmul.f32 %v1062_v43, %v1539_v11  ;;  %v1145_v52 = vld [vmem:[%s1598_s7] ss:$0 sm:$0xff]  ;;  %s1431_s7 = smov 1  }
 0x132   :  { %v325_v58 = vadd.f32 %v324_v57, %v153_v50  ;;  %v330_v61 = vmax.f32 %v321_v54, 0.0  ;;  %1171 = vmatpush3.bf16.msra.mxu1 %v1332_v3 }
 0x133   :  { %v333_v60 = vmax.f32 %v323_v56, 0.0  ;;  %1172 = vmatprep.subr.bf16.mxu1 %v1333_v4  ;;  %v112_v50 = vsel %vm93_vm0, %v108_v49, 0.0 }
 0x134   :  { %v334_v62 = vmax.f32 %v325_v58, 0.0  ;;  %113 = vadd.xlane.f32.xlu1 %v112_v50  ;;  %v1162_v58 = vld [vmem:[%s1600_s9] ss:$0 sm:$0xff] }
 0x135   :  { %v337_v63 = vpack.c.bf16 %v333_v60, %v329_v59 }
 0x136   :  { %v338_v0 = vpack.c.bf16 %v334_v62, %v330_v61  ;;  %1173 = vmatpush3.bf16.msra.mxu1 %v1334_v5 }
 0x137   :  { %1174 = vmatprep.subr.bf16.mxu1 %v1335_v6  ;;  %v1163_v6 = vld [vmem:[#allocation2] ss:$0 sm:$0xff] }
 0x138   :  { %810 = vmatprep.mubr.bf16.mxu0 %v338_v0 }
 0x139   :  { %811 = vmatmul.mubr.bf16.vlgmr.msra.gmra.mrb[8].mxu0 %v337_v63 }
 0x13a   :  { %1175 = vmatpush3.bf16.msra.mxu1 %v1336_v7 }
 0x13b   :  { %1176 = vmatprep.subr.bf16.mxu1 %v1337_v8 }
 0x13e   :  { %1177 = vmatpush3.bf16.msra.mxu1 %v1338_v9 }
 0x13f   :  { %1178 = vmatprep.subr.bf16.mxu1 %v1339_v12 }
 0x142   :  { %1179 = vmatpush3.bf16.msra.mxu1 %v1340_v13 }
 0x143   :  { %1180 = vmatprep.subr.bf16.mxu1 %v1341_v14 }
 0x146   :  { %1181 = vmatpush3.bf16.msra.mxu1 %v1342_v15 }
 0x1b6   :  { %v96_v63 = vpop.xlane.xlu0 %95 }
 0x1b7   :  { %v115_v2 = vadd.f32 1.0, %v96_v63 }
 0x1ba   :  { %v111_v0 = vpop.xlane.xlu1 %110 }
 0x1bb   :  { %v99_v1 = vpop.xlane.xlu0 %98  ;;  %v117_v5 = vmul.f32 %v115_v2, %v111_v0 }
 0x1bc   :  { %v116_v4 = vadd.f32 1.0, %v99_v1 }
 0x1c1   :  { %v114_v3 = vpop.xlane.xlu1 %113 }
 0x1c2   :  { %v118_v8 = vmul.f32 %v116_v4, %v114_v3 }
 0x1fc   :  { %v769_v16 = vpop.f32.mrb[0].mxu1 }
 0x1fd   :  { %v771_v17 = vpop.f32.mrb[1].mxu1  ;;  %v770_v23 = vadd.f32 %v769_v16, %v408_v21 }
 0x1fe   :  { %v773_v18 = vpop.f32.mrb[2].mxu1  ;;  %v772_v24 = vadd.f32 %v771_v17, %v412_v22 }
 0x1ff   :  { %v775_v19 = vpop.f32.mrb[3].mxu1  ;;  %v774_v29 = vadd.f32 %v773_v18, %v408_v21 }
 0x200   :  { %v776_v32 = vadd.f32 %v775_v19, %v412_v22 }
 0x20c   :  { %v812_v27 = vpop.f32.mrb[8].mxu0 }
 0x20d   :  { %v813_v30 = vadd.f32 %v812_v27, %v770_v23  ;;  %v814_v31 = vpop.f32.mrb[9].mxu0 }
 0x20e   :  { %v815_v33 = vadd.f32 %v814_v31, %v772_v24  ;;  %v816_v34 = vpop.f32.mrb[10].mxu0 }
 0x20f   :  { %v817_v35 = vadd.f32 %v816_v34, %v774_v29  ;;  %v818_v36 = vpop.f32.mrb[11].mxu0  ;;  %v821_v38 = vmax.f32 %v813_v30, 0.0 }
 0x210   :  { %v819_v37 = vadd.f32 %v818_v36, %v776_v32  ;;  %v822_v40 = vmax.f32 %v815_v33, 0.0 }
 0x211   :  { %v823_v39 = vmax.f32 %v817_v35, 0.0 }
 0x212   :  { %v824_v41 = vmax.f32 %v819_v37, 0.0 }
 0x213   :  { %v825_v26 = vpack.c.bf16 %v823_v39, %v821_v38 }
 0x214   :  { %v826_v42 = vpack.c.bf16 %v824_v41, %v822_v40 }
 0x216   :  { %994 = vmatprep.mubr.bf16.mxu1 %v826_v42 }
 0x217   :  { %995 = vmatmul.mubr.bf16.vlgmr.msra.gmra.mrb[4].mxu1 %v825_v26 }
 0x2ea   :  { %v1182_v51 = vpop.f32.mrb[4].mxu1 }
 0x2eb   :  { %v1183_v10 = vpop.f32.mrb[5].mxu1 }
 0x2ec   :  { %v1184_v53 = vadd.f32 %v1183_v10, %v1182_v51  ;;  %v1185_v54 = vpop.f32.mrb[6].mxu1 }
 0x2ed   :  { %v1186_v55 = vpop.f32.mrb[7].mxu1 }
 0x2ee   :  { %v997_v56 = vadd.f32 %v1184_v53, %v1145_v52  ;;  %v1187_v57 = vadd.f32 %v1186_v55, %v1185_v54 }
 0x2f0   :  { %v1003_v11 = vmax.f32 %v997_v56, 0.0  ;;  %v1000_v59 = vadd.f32 %v1187_v57, %v1145_v52 }
 0x2f2   :  { %v1004_v60 = vmax.f32 %v1000_v59, 0.0  ;;  %v1012_v61 = vmul.f32 %v1162_v58, %v1003_v11 }
 0x2f4   :  { %1014 = vadd.xlane.f32.xlu0 %v1012_v61  ;;  %v1013_v62 = vmul.f32 %v1162_v58, %v1004_v60 }
 0x2f6   :  { %1016 = vadd.xlane.f32.xlu1 %v1013_v62 }
 0x381   :  { %v1015_v7 = vpop.xlane.xlu0 %1014 }
 0x382   :  { %v1018_v9 = vadd.f32 %v1015_v7, %v117_v5 }
 0x383   :  { %v1017_v12 = vpop.xlane.xlu1 %1016 }
 0x384   :  { %v1027_v13 = vadd.f32 %v1163_v6, %v1018_v9  ;;  %v1019_v14 = vadd.f32 %v1017_v12, %v118_v8 }
 0x386   :  { %v1028_v15 = vadd.f32 %v1163_v6, %v1019_v14  ;;  %1043 = vrot.lane.b32.xlu0 %v1027_v13, %s1431_s7  ;;  %v1164_v16 = vmul.f32 -1.442695, %v1027_v13 }
 0x388   :  { %1045 = vrot.lane.b32.xlu1 %v1028_v15, %s1431_s7  ;;  %v1165_v17 = vmul.f32 -1.442695, %v1028_v15  ;;  %1343 = vpow2.f32 %v1164_v16 }
 0x38a   :  { %1345 = vpow2.f32 %v1165_v17 }
 0x392   :  { %v1344_v18 = vpop.eup %1343 }
 0x393   :  { %v1035_v20 = vadd.f32 1.0, %v1344_v18 }
 0x394   :  { %v1346_v19 = vpop.eup %1345 }
 0x395   :  { %v1036_v21 = vadd.f32 1.0, %v1346_v19  ;;  %1347 = vrcp.f32 %v1035_v20 }
 0x397   :  { %1349 = vrcp.f32 %v1036_v21 }
 0x39f   :  { %v1348_v22 = vpop.eup %1347 }
 0x3a1   :  { %v1350_v27 = vpop.eup %1349 }
 0x3f8   :  { %v1044_v23 = vpop.permute.xlu0 %1043 }
 0x3f9   :  { %v1050_v24 = vsel %vm1049_vm1, %v1348_v22, %v1044_v23 }
 0x3fa   :  { %1053 = vst.msk [vmem:[%s1602_s11] sm:$0xff] %vm1052_vm2, %v1050_v24  ;;  %v1046_v29 = vpop.permute.xlu1 %1045 }
 0x3fb   :  { %v1051_v30 = vsel %vm1049_vm1, %v1350_v27, %v1046_v29 }
 0x3fc   :  { %1054 = vst.msk [vmem:[%s1602_s11 + $0x8] sm:$0xff] %vm1052_vm2, %v1051_v30 }
 0x3fd   :  { %1059 = vsyncpa [#allocation4], 1 }
 0x3fe   :  { %1060 = vsyncpa [#allocation6], 1 }

</bundles_post_ra>
